<compile_context>
chip_gen: v5e
topology: v5e:2x2
jax: 0.10.0
libtpu: 0.0.40
codegen_flags: <defaults>
</compile_context>

<pallas_src>
import functools

import jax
import jax.numpy as jnp
from jax.experimental import pallas as pl
from jax.experimental.pallas import tpu as pltpu


def _conv_block_kernel(x_ref, b1_ref, b2_ref, bias1_ref, bias2_ref,
                       g1_ref, be1_ref, g2_ref, be2_ref,
                       s1_ref, s1t_ref, s2_ref, s2t_ref,
                       o_ref, h_ref, *,
                       N, KH, p, Ho1, Wo1, Ho2, Wo2, L_in1, L1, L2,
                       batch_norm, eps, compute_dtype):
    """Fused ConvBlock forward on one VMEM-resident block.

    x_ref     : (N, Ho1+KH-1, W*Cin) f32, input zero-padded along H only.
    b1_ref    : (KH, W*Cin,   Wo1*Cout) banded conv-1 weights (compute_dtype).
    b2_ref    : (KH, Wo1*Cout, Wo2*Cout) banded conv-2 weights (compute_dtype).
    bias*_ref : (1, Wo*Cout) channel-tiled bias (only used if batch_norm=False).
    g*/be*    : (1, Cout) BatchNorm gamma / beta.
    s*_ref    : (Wo*Cout, Cout) 0/1 channel-selection matrix; s*t its transpose.
    o_ref     : (N*Ho2, Wo2*Cout) f32 output (lane-dense last dim).
    h_ref     : (N, Ho1+2p, Wo1*Cout) f32 VMEM scratch holding the H-padded
                stage-1 activation (never written to HBM).
    """

    def bn_bias_relu(acc, n_rows, wo, bias_ref, g_ref, be_ref, scat_ref,
                     scat_t_ref):
        if batch_norm:
            # One-pass batch stats folded into a per-channel scale/shift.
            inv_cnt = 1.0 / float(n_rows * wo)
            rsum = jnp.sum(acc, axis=0, keepdims=True)                # (1, L)
            rsq = jnp.sum(acc * acc, axis=0, keepdims=True)           # (1, L)
            csum = jnp.dot(rsum, scat_ref[...],
                           preferred_element_type=jnp.float32)        # (1, C)
            csq = jnp.dot(rsq, scat_ref[...],
                          preferred_element_type=jnp.float32)         # (1, C)
            mean = csum * inv_cnt
            var = csq * inv_cnt - mean * mean                         # biased
            scale = g_ref[...] * jax.lax.rsqrt(var + eps)
            shift = be_ref[...] - mean * scale
            srow = jnp.dot(scale, scat_t_ref[...],
                           preferred_element_type=jnp.float32)        # (1, L)
            trow = jnp.dot(shift, scat_t_ref[...],
                           preferred_element_type=jnp.float32)        # (1, L)
            acc = acc * srow + trow
        else:
            acc = acc + bias_ref[...]
        return jnp.maximum(acc, 0.0)

    # ---------------- stage 1: conv -> (BN) -> ReLU -------------------------
    acc1 = jnp.zeros((N * Ho1, L1), jnp.float32)
    for kh in range(KH):                                   # KH matmuls total
        xk = x_ref[:, kh:kh + Ho1, :].reshape(N * Ho1, L_in1)
        acc1 = acc1 + jnp.dot(xk.astype(compute_dtype), b1_ref[kh],
                              preferred_element_type=jnp.float32)
    h1 = bn_bias_relu(acc1, N * Ho1, Wo1, bias1_ref, g1_ref, be1_ref,
                      s1_ref, s1t_ref)

    # -------- stash stage-1 activation (H-padded) in VMEM scratch -----------
    if p > 0:
        zpad = jnp.zeros((N, p, L1), jnp.float32)
        h_ref[:, 0:p, :] = zpad
        h_ref[:, p + Ho1:p + Ho1 + p, :] = zpad
    h_ref[:, p:p + Ho1, :] = h1.reshape(N, Ho1, L1)

    # ---------------- stage 2: conv -> (BN) -> ReLU -------------------------
    acc2 = jnp.zeros((N * Ho2, L2), jnp.float32)
    for kh in range(KH):
        hk = h_ref[:, kh:kh + Ho2, :].reshape(N * Ho2, L1)
        acc2 = acc2 + jnp.dot(hk.astype(compute_dtype), b2_ref[kh],
                              preferred_element_type=jnp.float32)
    o_ref[...] = bn_bias_relu(acc2, N * Ho2, Wo2, bias2_ref, g2_ref, be2_ref,
                              s2_ref, s2t_ref)


def _banded_weight(w_oihw, w_in_size, p):
    """Fold the KW taps and W-axis zero padding of a conv into banded matrices.

    Returns (KH, W_in*Cin, Wo*Cout) with
      B[kh, w_in*Cin + ci, w_out*Cout + co] = w[co, ci, kh, w_in - w_out + p]
    and zero where the tap index falls outside [0, KW) (i.e. W zero-padding).
    """
    c_out, c_in, kh_sz, kw_sz = w_oihw.shape
    wo = w_in_size + 2 * p - kw_sz + 1
    w_t = jnp.transpose(w_oihw, (2, 3, 1, 0))             # (KH, KW, Cin, Cout)
    wi = jnp.arange(w_in_size)[:, None]
    wo_i = jnp.arange(wo)[None, :]
    kw = wi - wo_i + p                                    # (W_in, Wo)
    valid = (kw >= 0) & (kw < kw_sz)
    kw_c = jnp.clip(kw, 0, kw_sz - 1)
    g = w_t[:, kw_c]                                      # (KH, W_in, Wo, Cin, Cout)
    g = jnp.where(valid[None, :, :, None, None], g, 0.0)
    g = jnp.transpose(g, (0, 1, 3, 2, 4))                 # (KH, W_in, Cin, Wo, Cout)
    return g.reshape(kh_sz, w_in_size * c_in, wo * c_out)


def _chan_select(wo, c_out):
    """(Wo*Cout, Cout) 0/1 matrix with scat[w*Cout + c, c] = 1, and transpose."""
    j = jnp.arange(wo * c_out)
    c = jnp.arange(c_out)
    scat = (j[:, None] % c_out == c[None, :]).astype(jnp.float32)
    return scat, scat.T


def conv_block_forward(x_nchw, params, *, padding, batch_norm,
                       compute_dtype=jnp.bfloat16, eps=1e-5):
    """ConvBlock forward. x_nchw: (N, Cin, H, W) f32 -> (N, Cout, H', W') f32."""
    N, Cin, H, W = x_nchw.shape
    w1, w2 = params["w1"], params["w2"]
    Cout = int(w1.shape[0])
    KH, KW = int(w1.shape[2]), int(w1.shape[3])
    p = int(padding)                     # PyTorch: padding=True -> padding=1

    Ho1, Wo1 = H + 2 * p - KH + 1, W + 2 * p - KW + 1
    Ho2, Wo2 = Ho1 + 2 * p - KH + 1, Wo1 + 2 * p - KW + 1
    L_in1, L1, L2 = W * Cin, Wo1 * Cout, Wo2 * Cout

    # NCHW -> NHWC once at the block boundary; pad H only (W padding is folded
    # into the banded weights); flatten (W, C) into the lane dimension.
    x = jnp.transpose(x_nchw, (0, 2, 3, 1))
    x = jnp.pad(x, ((0, 0), (p, p), (0, 0), (0, 0)))
    x = x.reshape(N, H + 2 * p, L_in1).astype(jnp.float32)

    B1 = _banded_weight(w1, W, p).astype(compute_dtype)
    B2 = _banded_weight(w2, Wo1, p).astype(compute_dtype)
    bias1 = jnp.tile(params["b1"].astype(jnp.float32), Wo1).reshape(1, L1)
    bias2 = jnp.tile(params["b2"].astype(jnp.float32), Wo2).reshape(1, L2)
    g1 = params["g1"].reshape(1, Cout).astype(jnp.float32)
    be1 = params["bb1"].reshape(1, Cout).astype(jnp.float32)
    g2 = params["g2"].reshape(1, Cout).astype(jnp.float32)
    be2 = params["bb2"].reshape(1, Cout).astype(jnp.float32)
    s1, s1t = _chan_select(Wo1, Cout)
    s2, s2t = _chan_select(Wo2, Cout)

    kernel = functools.partial(
        _conv_block_kernel, N=N, KH=KH, p=p, Ho1=Ho1, Wo1=Wo1, Ho2=Ho2,
        Wo2=Wo2, L_in1=L_in1, L1=L1, L2=L2, batch_norm=batch_norm, eps=eps,
        compute_dtype=compute_dtype)

    vmem = pl.BlockSpec(memory_space=pltpu.MemorySpace.VMEM)
    # Single-block launch: everything fits VMEM at these shapes and BatchNorm
    # batch statistics need the whole batch inside one invocation.
    # TODO(synk): for large N/H/W, add row tiling with a grid ("parallel" axis
    # for v7x megacore, smaller tiles on v5e) and grid-accumulated BN stats
    # (pl.when init/finalize) instead of this single-block launch.
    out = pl.pallas_call(
        kernel,
        out_shape=jax.ShapeDtypeStruct((N * Ho2, L2), jnp.float32),
        in_specs=[vmem] * 13,
        out_specs=vmem,
        scratch_shapes=[pltpu.VMEM((N, Ho1 + 2 * p, L1), jnp.float32)],
    )(x, B1, B2, bias1, bias2, g1, be1, g2, be2, s1, s1t, s2, s2t)

    out = out.reshape(N, Ho2, Wo2, Cout)
    return jnp.transpose(out, (0, 3, 1, 2))               # back to NCHW


def init_params(key, in_channels, out_channels, kernel_size):
    k1, k2, k3, k4 = jax.random.split(key, 4)
    fan1 = in_channels * kernel_size * kernel_size
    fan2 = out_channels * kernel_size * kernel_size
    s1 = 1.0 / jnp.sqrt(fan1)
    s2 = 1.0 / jnp.sqrt(fan2)
    return {
        "w1": jax.random.uniform(k1, (out_channels, in_channels, kernel_size,
                                      kernel_size), jnp.float32, -s1, s1),
        "b1": jax.random.uniform(k2, (out_channels,), jnp.float32, -s1, s1),
        "g1": jnp.ones((out_channels,), jnp.float32),
        "bb1": jnp.zeros((out_channels,), jnp.float32),
        "w2": jax.random.uniform(k3, (out_channels, out_channels, kernel_size,
                                      kernel_size), jnp.float32, -s2, s2),
        "b2": jax.random.uniform(k4, (out_channels,), jnp.float32, -s2, s2),
        "g2": jnp.ones((out_channels,), jnp.float32),
        "bb2": jnp.zeros((out_channels,), jnp.float32),
    }


def _reference(x, params, *, padding, batch_norm, eps=1e-5, operand_dtype=None):
    """Plain-JAX NCHW reference.  operand_dtype (e.g. bf16) optionally rounds
    the conv operands the same way the kernel's MXU inputs are rounded."""
    def cast(a):
        if operand_dtype is None:
            return a
        return a.astype(operand_dtype).astype(jnp.float32)

    def stage(x, w, b, g, bb):
        p = int(padding)
        y = jax.lax.conv_general_dilated(
            cast(x), cast(w), window_strides=(1, 1), padding=[(p, p), (p, p)],
            dimension_numbers=("NCHW", "OIHW", "NCHW"),
            precision=jax.lax.Precision.HIGHEST)
        y = y + b[None, :, None, None]
        if batch_norm:
            mean = jnp.mean(y, axis=(0, 2, 3), keepdims=True)
            var = jnp.mean((y - mean) ** 2, axis=(0, 2, 3), keepdims=True)
            y = (y - mean) * jax.lax.rsqrt(var + eps)
            y = y * g[None, :, None, None] + bb[None, :, None, None]
        return jnp.maximum(y, 0.0)

    y = stage(x, params["w1"], params["b1"], params["g1"], params["bb1"])
    y = stage(y, params["w2"], params["b2"], params["g2"], params["bb2"])
    return y


if __name__ == "__main__":
    # Module config: ConvBlock(in_channels=4, out_channels=8, kernel_size=3,
    #                          padding=True, batch_norm=True)
    N, Cin, H, W = 2, 4, 16, 16
    Cout, K = 8, 3
    padding, batch_norm = True, True

    key = jax.random.PRNGKey(0)
    kx, kp = jax.random.split(key)
    x = jax.random.normal(kx, (N, Cin, H, W), jnp.float32)
    params = init_params(kp, Cin, Cout, K)

    out = conv_block_forward(x, params, padding=padding, batch_norm=batch_norm)
    out = jax.block_until_ready(out)
    assert out.shape == (N, Cout, H, W), out.shape

    # Check against a reference whose conv operands are rounded to bf16 exactly
    # like the kernel's MXU inputs (f32 accumulation in both); slack covers
    # summation order and bf16 re-rounding of the stage-1 activation.
    ref_cast = _reference(x, params, padding=padding, batch_norm=batch_norm,
                          operand_dtype=jnp.bfloat16)
    err_cast = float(jnp.max(jnp.abs(out - ref_cast)))
    assert jnp.allclose(out, ref_cast, atol=2e-2, rtol=2e-2), err_cast

    # Sanity check against the exact f32 reference; slack = bf16 operand
    # rounding propagated through two conv+BN stages.
    ref = _reference(x, params, padding=padding, batch_norm=batch_norm)
    err = float(jnp.max(jnp.abs(out - ref)))
    assert jnp.allclose(out, ref, atol=6e-2, rtol=6e-2), err

    print("KERNEL_OK")
</pallas_src>

<mosaic_0001>
module attributes {stable_mosaic.version = 11 : i64} {
  func.func @_conv_block_kernel(%arg0: memref<2x18x64xf32, #tpu.memory_space<vmem>>, %arg1: memref<3x64x128xbf16, #tpu.memory_space<vmem>>, %arg2: memref<3x128x128xbf16, #tpu.memory_space<vmem>>, %arg3: memref<1x128xf32, #tpu.memory_space<vmem>>, %arg4: memref<1x128xf32, #tpu.memory_space<vmem>>, %arg5: memref<1x8xf32, #tpu.memory_space<vmem>>, %arg6: memref<1x8xf32, #tpu.memory_space<vmem>>, %arg7: memref<1x8xf32, #tpu.memory_space<vmem>>, %arg8: memref<1x8xf32, #tpu.memory_space<vmem>>, %arg9: memref<128x8xf32, #tpu.memory_space<vmem>>, %arg10: memref<8x128xf32, #tpu.memory_space<vmem>>, %arg11: memref<128x8xf32, #tpu.memory_space<vmem>>, %arg12: memref<8x128xf32, #tpu.memory_space<vmem>>, %arg13: memref<32x128xf32, #tpu.memory_space<vmem>>, %arg14: memref<2x18x128xf32, #tpu.memory_space<vmem>>) attributes {dimension_semantics = [], scalar_prefetch = 0 : i64, scratch_operands = 1 : i64, tpu.core_type = #tpu.core_type<tc>} {
    %cst = arith.constant 0.000000e+00 : f32
    %0 = vector.broadcast %cst : f32 to vector<32x128xf32>
    %c0 = arith.constant 0 : index
    %c0_0 = arith.constant 0 : index
    %c0_1 = arith.constant 0 : index
    %1 = vector.load %arg0[%c0, %c0_0, %c0_1] : memref<2x18x64xf32, #tpu.memory_space<vmem>>, vector<2x16x64xf32>
    %2 = vector.shape_cast %1 : vector<2x16x64xf32> to vector<32x64xf32>
    %3 = arith.truncf %2 : vector<32x64xf32> to vector<32x64xbf16>
    %c0_2 = arith.constant 0 : index
    %c0_3 = arith.constant 0 : index
    %c0_4 = arith.constant 0 : index
    %4 = vector.load %arg1[%c0_2, %c0_3, %c0_4] : memref<3x64x128xbf16, #tpu.memory_space<vmem>>, vector<1x64x128xbf16>
    %5 = vector.shape_cast %4 : vector<1x64x128xbf16> to vector<64x128xbf16>
    %cst_5 = arith.constant dense<0.000000e+00> : vector<32x128xf32>
    %6 = tpu.matmul %3, %5, %cst_5 {dimension_numbers = #tpu.dot_dimension_numbers<[1], [0], [0], [1], [0, 0, 1, 1], [], []>} : vector<32x64xbf16>, vector<64x128xbf16>, vector<32x128xf32> -> vector<32x128xf32>
    %7 = arith.addf %0, %6 : vector<32x128xf32>
    %c0_6 = arith.constant 0 : index
    %c1 = arith.constant 1 : index
    %c0_7 = arith.constant 0 : index
    %8 = vector.load %arg0[%c0_6, %c1, %c0_7] : memref<2x18x64xf32, #tpu.memory_space<vmem>>, vector<2x16x64xf32>
    %9 = vector.shape_cast %8 : vector<2x16x64xf32> to vector<32x64xf32>
    %10 = arith.truncf %9 : vector<32x64xf32> to vector<32x64xbf16>
    %c1_8 = arith.constant 1 : index
    %c0_9 = arith.constant 0 : index
    %c0_10 = arith.constant 0 : index
    %11 = vector.load %arg1[%c1_8, %c0_9, %c0_10] : memref<3x64x128xbf16, #tpu.memory_space<vmem>>, vector<1x64x128xbf16>
    %12 = vector.shape_cast %11 : vector<1x64x128xbf16> to vector<64x128xbf16>
    %cst_11 = arith.constant dense<0.000000e+00> : vector<32x128xf32>
    %13 = tpu.matmul %10, %12, %cst_11 {dimension_numbers = #tpu.dot_dimension_numbers<[1], [0], [0], [1], [0, 0, 1, 1], [], []>} : vector<32x64xbf16>, vector<64x128xbf16>, vector<32x128xf32> -> vector<32x128xf32>
    %14 = arith.addf %7, %13 : vector<32x128xf32>
    %c0_12 = arith.constant 0 : index
    %c2 = arith.constant 2 : index
    %c0_13 = arith.constant 0 : index
    %15 = vector.load %arg0[%c0_12, %c2, %c0_13] : memref<2x18x64xf32, #tpu.memory_space<vmem>>, vector<2x16x64xf32>
    %16 = vector.shape_cast %15 : vector<2x16x64xf32> to vector<32x64xf32>
    %17 = arith.truncf %16 : vector<32x64xf32> to vector<32x64xbf16>
    %c2_14 = arith.constant 2 : index
    %c0_15 = arith.constant 0 : index
    %c0_16 = arith.constant 0 : index
    %18 = vector.load %arg1[%c2_14, %c0_15, %c0_16] : memref<3x64x128xbf16, #tpu.memory_space<vmem>>, vector<1x64x128xbf16>
    %19 = vector.shape_cast %18 : vector<1x64x128xbf16> to vector<64x128xbf16>
    %cst_17 = arith.constant dense<0.000000e+00> : vector<32x128xf32>
    %20 = tpu.matmul %17, %19, %cst_17 {dimension_numbers = #tpu.dot_dimension_numbers<[1], [0], [0], [1], [0, 0, 1, 1], [], []>} : vector<32x64xbf16>, vector<64x128xbf16>, vector<32x128xf32> -> vector<32x128xf32>
    %21 = arith.addf %14, %20 : vector<32x128xf32>
    %cst_18 = arith.constant dense<0.000000e+00> : vector<128xf32>
    %22 = vector.multi_reduction <add>, %21, %cst_18 [0] : vector<32x128xf32> to vector<128xf32>
    %23 = vector.shape_cast %22 : vector<128xf32> to vector<1x128xf32>
    %24 = arith.mulf %21, %21 : vector<32x128xf32>
    %cst_19 = arith.constant dense<0.000000e+00> : vector<128xf32>
    %25 = vector.multi_reduction <add>, %24, %cst_19 [0] : vector<32x128xf32> to vector<128xf32>
    %26 = vector.shape_cast %25 : vector<128xf32> to vector<1x128xf32>
    %c0_20 = arith.constant 0 : index
    %c0_21 = arith.constant 0 : index
    %27 = vector.load %arg9[%c0_20, %c0_21] : memref<128x8xf32, #tpu.memory_space<vmem>>, vector<128x8xf32>
    %cst_22 = arith.constant dense<0.000000e+00> : vector<1x8xf32>
    %28 = tpu.matmul %23, %27, %cst_22 {dimension_numbers = #tpu.dot_dimension_numbers<[1], [0], [0], [1], [0, 0, 1, 1], [], []>} : vector<1x128xf32>, vector<128x8xf32>, vector<1x8xf32> -> vector<1x8xf32>
    %c0_23 = arith.constant 0 : index
    %c0_24 = arith.constant 0 : index
    %29 = vector.load %arg9[%c0_23, %c0_24] : memref<128x8xf32, #tpu.memory_space<vmem>>, vector<128x8xf32>
    %cst_25 = arith.constant dense<0.000000e+00> : vector<1x8xf32>
    %30 = tpu.matmul %26, %29, %cst_25 {dimension_numbers = #tpu.dot_dimension_numbers<[1], [0], [0], [1], [0, 0, 1, 1], [], []>} : vector<1x128xf32>, vector<128x8xf32>, vector<1x8xf32> -> vector<1x8xf32>
    %cst_26 = arith.constant 0.001953125 : f32
    %31 = vector.broadcast %cst_26 : f32 to vector<1x8xf32>
    %32 = arith.mulf %28, %31 : vector<1x8xf32>
    %cst_27 = arith.constant 0.001953125 : f32
    %33 = vector.broadcast %cst_27 : f32 to vector<1x8xf32>
    %34 = arith.mulf %30, %33 : vector<1x8xf32>
    %35 = arith.mulf %32, %32 : vector<1x8xf32>
    %36 = arith.subf %34, %35 : vector<1x8xf32>
    %c0_28 = arith.constant 0 : index
    %c0_29 = arith.constant 0 : index
    %37 = vector.load %arg5[%c0_28, %c0_29] : memref<1x8xf32, #tpu.memory_space<vmem>>, vector<1x8xf32>
    %cst_30 = arith.constant 9.99999974E-6 : f32
    %38 = vector.broadcast %cst_30 : f32 to vector<1x8xf32>
    %39 = arith.addf %36, %38 : vector<1x8xf32>
    %40 = math.rsqrt %39 : vector<1x8xf32>
    %41 = arith.mulf %37, %40 : vector<1x8xf32>
    %c0_31 = arith.constant 0 : index
    %c0_32 = arith.constant 0 : index
    %42 = vector.load %arg6[%c0_31, %c0_32] : memref<1x8xf32, #tpu.memory_space<vmem>>, vector<1x8xf32>
    %43 = arith.mulf %32, %41 : vector<1x8xf32>
    %44 = arith.subf %42, %43 : vector<1x8xf32>
    %c0_33 = arith.constant 0 : index
    %c0_34 = arith.constant 0 : index
    %45 = vector.load %arg10[%c0_33, %c0_34] : memref<8x128xf32, #tpu.memory_space<vmem>>, vector<8x128xf32>
    %cst_35 = arith.constant dense<0.000000e+00> : vector<1x128xf32>
    %46 = tpu.matmul %41, %45, %cst_35 {dimension_numbers = #tpu.dot_dimension_numbers<[1], [0], [0], [1], [0, 0, 1, 1], [], []>} : vector<1x8xf32>, vector<8x128xf32>, vector<1x128xf32> -> vector<1x128xf32>
    %c0_36 = arith.constant 0 : index
    %c0_37 = arith.constant 0 : index
    %47 = vector.load %arg10[%c0_36, %c0_37] : memref<8x128xf32, #tpu.memory_space<vmem>>, vector<8x128xf32>
    %cst_38 = arith.constant dense<0.000000e+00> : vector<1x128xf32>
    %48 = tpu.matmul %44, %47, %cst_38 {dimension_numbers = #tpu.dot_dimension_numbers<[1], [0], [0], [1], [0, 0, 1, 1], [], []>} : vector<1x8xf32>, vector<8x128xf32>, vector<1x128xf32> -> vector<1x128xf32>
    %49 = vector.broadcast %46 : vector<1x128xf32> to vector<32x128xf32>
    %50 = arith.mulf %21, %49 : vector<32x128xf32>
    %51 = vector.broadcast %48 : vector<1x128xf32> to vector<32x128xf32>
    %52 = arith.addf %50, %51 : vector<32x128xf32>
    %cst_39 = arith.constant 0.000000e+00 : f32
    %53 = vector.broadcast %cst_39 : f32 to vector<32x128xf32>
    %54 = arith.maximumf %52, %53 : vector<32x128xf32>
    %cst_40 = arith.constant 0.000000e+00 : f32
    %55 = vector.broadcast %cst_40 : f32 to vector<2x1x128xf32>
    %c0_41 = arith.constant 0 : index
    %c0_42 = arith.constant 0 : index
    %c0_43 = arith.constant 0 : index
    %56 = vector.load %arg14[%c0_41, %c0_42, %c0_43] : memref<2x18x128xf32, #tpu.memory_space<vmem>>, vector<2x1x128xf32>
    tpu.vector_store %arg14[%c0_41, %c0_42, %c0_43], %55 {strides = array<i32>} : memref<2x18x128xf32, #tpu.memory_space<vmem>>, vector<2x1x128xf32>,
    %c0_44 = arith.constant 0 : index
    %c17 = arith.constant 17 : index
    %c0_45 = arith.constant 0 : index
    %57 = vector.load %arg14[%c0_44, %c17, %c0_45] : memref<2x18x128xf32, #tpu.memory_space<vmem>>, vector<2x1x128xf32>
    tpu.vector_store %arg14[%c0_44, %c17, %c0_45], %55 {strides = array<i32>} : memref<2x18x128xf32, #tpu.memory_space<vmem>>, vector<2x1x128xf32>,
    %58 = vector.shape_cast %54 : vector<32x128xf32> to vector<2x16x128xf32>
    %c0_46 = arith.constant 0 : index
    %c1_47 = arith.constant 1 : index
    %c0_48 = arith.constant 0 : index
    %59 = vector.load %arg14[%c0_46, %c1_47, %c0_48] : memref<2x18x128xf32, #tpu.memory_space<vmem>>, vector<2x16x128xf32>
    tpu.vector_store %arg14[%c0_46, %c1_47, %c0_48], %58 {strides = array<i32>} : memref<2x18x128xf32, #tpu.memory_space<vmem>>, vector<2x16x128xf32>,
    %cst_49 = arith.constant 0.000000e+00 : f32
    %60 = vector.broadcast %cst_49 : f32 to vector<32x128xf32>
    %c0_50 = arith.constant 0 : index
    %c0_51 = arith.constant 0 : index
    %c0_52 = arith.constant 0 : index
    %61 = vector.load %arg14[%c0_50, %c0_51, %c0_52] : memref<2x18x128xf32, #tpu.memory_space<vmem>>, vector<2x16x128xf32>
    %62 = vector.shape_cast %61 : vector<2x16x128xf32> to vector<32x128xf32>
    %63 = arith.truncf %62 : vector<32x128xf32> to vector<32x128xbf16>
    %c0_53 = arith.constant 0 : index
    %c0_54 = arith.constant 0 : index
    %c0_55 = arith.constant 0 : index
    %64 = vector.load %arg2[%c0_53, %c0_54, %c0_55] : memref<3x128x128xbf16, #tpu.memory_space<vmem>>, vector<1x128x128xbf16>
    %65 = vector.shape_cast %64 : vector<1x128x128xbf16> to vector<128x128xbf16>
    %cst_56 = arith.constant dense<0.000000e+00> : vector<32x128xf32>
    %66 = tpu.matmul %63, %65, %cst_56 {dimension_numbers = #tpu.dot_dimension_numbers<[1], [0], [0], [1], [0, 0, 1, 1], [], []>} : vector<32x128xbf16>, vector<128x128xbf16>, vector<32x128xf32> -> vector<32x128xf32>
    %67 = arith.addf %60, %66 : vector<32x128xf32>
    %c0_57 = arith.constant 0 : index
    %c1_58 = arith.constant 1 : index
    %c0_59 = arith.constant 0 : index
    %68 = vector.load %arg14[%c0_57, %c1_58, %c0_59] : memref<2x18x128xf32, #tpu.memory_space<vmem>>, vector<2x16x128xf32>
    %69 = vector.shape_cast %68 : vector<2x16x128xf32> to vector<32x128xf32>
    %70 = arith.truncf %69 : vector<32x128xf32> to vector<32x128xbf16>
    %c1_60 = arith.constant 1 : index
    %c0_61 = arith.constant 0 : index
    %c0_62 = arith.constant 0 : index
    %71 = vector.load %arg2[%c1_60, %c0_61, %c0_62] : memref<3x128x128xbf16, #tpu.memory_space<vmem>>, vector<1x128x128xbf16>
    %72 = vector.shape_cast %71 : vector<1x128x128xbf16> to vector<128x128xbf16>
    %cst_63 = arith.constant dense<0.000000e+00> : vector<32x128xf32>
    %73 = tpu.matmul %70, %72, %cst_63 {dimension_numbers = #tpu.dot_dimension_numbers<[1], [0], [0], [1], [0, 0, 1, 1], [], []>} : vector<32x128xbf16>, vector<128x128xbf16>, vector<32x128xf32> -> vector<32x128xf32>
    %74 = arith.addf %67, %73 : vector<32x128xf32>
    %c0_64 = arith.constant 0 : index
    %c2_65 = arith.constant 2 : index
    %c0_66 = arith.constant 0 : index
    %75 = vector.load %arg14[%c0_64, %c2_65, %c0_66] : memref<2x18x128xf32, #tpu.memory_space<vmem>>, vector<2x16x128xf32>
    %76 = vector.shape_cast %75 : vector<2x16x128xf32> to vector<32x128xf32>
    %77 = arith.truncf %76 : vector<32x128xf32> to vector<32x128xbf16>
    %c2_67 = arith.constant 2 : index
    %c0_68 = arith.constant 0 : index
    %c0_69 = arith.constant 0 : index
    %78 = vector.load %arg2[%c2_67, %c0_68, %c0_69] : memref<3x128x128xbf16, #tpu.memory_space<vmem>>, vector<1x128x128xbf16>
    %79 = vector.shape_cast %78 : vector<1x128x128xbf16> to vector<128x128xbf16>
    %cst_70 = arith.constant dense<0.000000e+00> : vector<32x128xf32>
    %80 = tpu.matmul %77, %79, %cst_70 {dimension_numbers = #tpu.dot_dimension_numbers<[1], [0], [0], [1], [0, 0, 1, 1], [], []>} : vector<32x128xbf16>, vector<128x128xbf16>, vector<32x128xf32> -> vector<32x128xf32>
    %81 = arith.addf %74, %80 : vector<32x128xf32>
    %cst_71 = arith.constant dense<0.000000e+00> : vector<128xf32>
    %82 = vector.multi_reduction <add>, %81, %cst_71 [0] : vector<32x128xf32> to vector<128xf32>
    %83 = vector.shape_cast %82 : vector<128xf32> to vector<1x128xf32>
    %84 = arith.mulf %81, %81 : vector<32x128xf32>
    %cst_72 = arith.constant dense<0.000000e+00> : vector<128xf32>
    %85 = vector.multi_reduction <add>, %84, %cst_72 [0] : vector<32x128xf32> to vector<128xf32>
    %86 = vector.shape_cast %85 : vector<128xf32> to vector<1x128xf32>
    %c0_73 = arith.constant 0 : index
    %c0_74 = arith.constant 0 : index
    %87 = vector.load %arg11[%c0_73, %c0_74] : memref<128x8xf32, #tpu.memory_space<vmem>>, vector<128x8xf32>
    %cst_75 = arith.constant dense<0.000000e+00> : vector<1x8xf32>
    %88 = tpu.matmul %83, %87, %cst_75 {dimension_numbers = #tpu.dot_dimension_numbers<[1], [0], [0], [1], [0, 0, 1, 1], [], []>} : vector<1x128xf32>, vector<128x8xf32>, vector<1x8xf32> -> vector<1x8xf32>
    %c0_76 = arith.constant 0 : index
    %c0_77 = arith.constant 0 : index
    %89 = vector.load %arg11[%c0_76, %c0_77] : memref<128x8xf32, #tpu.memory_space<vmem>>, vector<128x8xf32>
    %cst_78 = arith.constant dense<0.000000e+00> : vector<1x8xf32>
    %90 = tpu.matmul %86, %89, %cst_78 {dimension_numbers = #tpu.dot_dimension_numbers<[1], [0], [0], [1], [0, 0, 1, 1], [], []>} : vector<1x128xf32>, vector<128x8xf32>, vector<1x8xf32> -> vector<1x8xf32>
    %cst_79 = arith.constant 0.001953125 : f32
    %91 = vector.broadcast %cst_79 : f32 to vector<1x8xf32>
    %92 = arith.mulf %88, %91 : vector<1x8xf32>
    %cst_80 = arith.constant 0.001953125 : f32
    %93 = vector.broadcast %cst_80 : f32 to vector<1x8xf32>
    %94 = arith.mulf %90, %93 : vector<1x8xf32>
    %95 = arith.mulf %92, %92 : vector<1x8xf32>
    %96 = arith.subf %94, %95 : vector<1x8xf32>
    %c0_81 = arith.constant 0 : index
    %c0_82 = arith.constant 0 : index
    %97 = vector.load %arg7[%c0_81, %c0_82] : memref<1x8xf32, #tpu.memory_space<vmem>>, vector<1x8xf32>
    %cst_83 = arith.constant 9.99999974E-6 : f32
    %98 = vector.broadcast %cst_83 : f32 to vector<1x8xf32>
    %99 = arith.addf %96, %98 : vector<1x8xf32>
    %100 = math.rsqrt %99 : vector<1x8xf32>
    %101 = arith.mulf %97, %100 : vector<1x8xf32>
    %c0_84 = arith.constant 0 : index
    %c0_85 = arith.constant 0 : index
    %102 = vector.load %arg8[%c0_84, %c0_85] : memref<1x8xf32, #tpu.memory_space<vmem>>, vector<1x8xf32>
    %103 = arith.mulf %92, %101 : vector<1x8xf32>
    %104 = arith.subf %102, %103 : vector<1x8xf32>
    %c0_86 = arith.constant 0 : index
    %c0_87 = arith.constant 0 : index
    %105 = vector.load %arg12[%c0_86, %c0_87] : memref<8x128xf32, #tpu.memory_space<vmem>>, vector<8x128xf32>
    %cst_88 = arith.constant dense<0.000000e+00> : vector<1x128xf32>
    %106 = tpu.matmul %101, %105, %cst_88 {dimension_numbers = #tpu.dot_dimension_numbers<[1], [0], [0], [1], [0, 0, 1, 1], [], []>} : vector<1x8xf32>, vector<8x128xf32>, vector<1x128xf32> -> vector<1x128xf32>
    %c0_89 = arith.constant 0 : index
    %c0_90 = arith.constant 0 : index
    %107 = vector.load %arg12[%c0_89, %c0_90] : memref<8x128xf32, #tpu.memory_space<vmem>>, vector<8x128xf32>
    %cst_91 = arith.constant dense<0.000000e+00> : vector<1x128xf32>
    %108 = tpu.matmul %104, %107, %cst_91 {dimension_numbers = #tpu.dot_dimension_numbers<[1], [0], [0], [1], [0, 0, 1, 1], [], []>} : vector<1x8xf32>, vector<8x128xf32>, vector<1x128xf32> -> vector<1x128xf32>
    %109 = vector.broadcast %106 : vector<1x128xf32> to vector<32x128xf32>
    %110 = arith.mulf %81, %109 : vector<32x128xf32>
    %111 = vector.broadcast %108 : vector<1x128xf32> to vector<32x128xf32>
    %112 = arith.addf %110, %111 : vector<32x128xf32>
    %cst_92 = arith.constant 0.000000e+00 : f32
    %113 = vector.broadcast %cst_92 : f32 to vector<32x128xf32>
    %114 = arith.maximumf %112, %113 : vector<32x128xf32>
    %c0_93 = arith.constant 0 : index
    %c0_94 = arith.constant 0 : index
    %115 = vector.load %arg13[%c0_93, %c0_94] : memref<32x128xf32, #tpu.memory_space<vmem>>, vector<32x128xf32>
    tpu.vector_store %arg13[%c0_93, %c0_94], %114 {strides = array<i32>} : memref<32x128xf32, #tpu.memory_space<vmem>>, vector<32x128xf32>,
    return
  }
}

</mosaic_0001>

<bundles_post_ra>
// kernel: tpu_custom_call.1
= control target key start
LH: loop header
LB: loop body
LE: loop exit
PB: predicated region body
PF: predicated region fallthrough
CT: control target
= control target key end

     0   :  { %s1517_s0 = inlined_call_operand.vmem [shape: f32[2,18,64], index: 0, kind: input, shape index: {}]   ;;  %s1518_s1 = inlined_call_operand.vmem [shape: bf16[3,64,128], index: 1, kind: input, shape index: {}]   ;;  %s1519_s2 = inlined_call_operand.vmem [shape: bf16[3,128,128], index: 2, kind: input, shape index: {}]   ;;  %s1520_s3 = inlined_call_operand.vmem [shape: f32[1,128], index: 3, kind: input, shape index: {}]   ;;  %s1521_s4 = inlined_call_operand.vmem [shape: f32[1,128], index: 4, kind: input, shape index: {}]   ;;  %s1522_s5 = inlined_call_operand.vmem [shape: f32[1,8], index: 5, kind: input, shape index: {}]   ;;  %s1523_s6 = inlined_call_operand.vmem [shape: f32[1,8], index: 6, kind: input, shape index: {}]   ;;  %s1524_s7 = inlined_call_operand.vmem [shape: f32[1,8], index: 7, kind: input, shape index: {}]   ;;  %s1525_s8 = inlined_call_operand.vmem [shape: f32[1,8], index: 8, kind: input, shape index: {}]   ;;  %s1526_s9 = inlined_call_operand.vmem [shape: f32[128,8], index: 9, kind: input, shape index: {}]   ;;  %s1527_s10 = inlined_call_operand.vmem [shape: f32[8,128], index: 10, kind: input, shape index: {}]   ;;  %s1528_s11 = inlined_call_operand.vmem [shape: f32[128,8], index: 11, kind: input, shape index: {}]   ;;  %s1529_s12 = inlined_call_operand.vmem [shape: f32[8,128], index: 12, kind: input, shape index: {}]   ;;  %s1530_s13 = inlined_call_operand.hbm [shape: f32[32,128], index: 13, kind: output, shape index: {}]  }
   0x1   :  { %v1073_v0 = vld [vmem:[%s1518_s1 + $0x38] sm:$0xff]  ;;  %v1072_v3 = vld [vmem:[%s1518_s1 + $0x30] sm:$0xff]  ;;  %v1071_v6 = vld [vmem:[%s1518_s1 + $0x28] sm:$0xff] }
   0x2   :  { %v1069_v1 = vld [vmem:[%s1518_s1 + $0x18] sm:$0xff]  ;;  %110 = vmatpush.bf16.msra.mxu0 %v1073_v0  ;;  %v1068_v4 = vld [vmem:[%s1518_s1 + $0x10] sm:$0xff]  ;;  %v1067_v7 = vld [vmem:[%s1518_s1 + $0x8] sm:$0xff] }
   0x3   :  { %v1077_v2 = vld [vmem:[%s1518_s1 + $0x58] sm:$0xff]  ;;  %159 = vmatpush.bf16.msra.mxu1 %v1069_v1  ;;  %v1076_v5 = vld [vmem:[%s1518_s1 + $0x50] sm:$0xff]  ;;  %v1075_v8 = vld [vmem:[%s1518_s1 + $0x48] sm:$0xff] }
   0x4   :  { %223 = vmatpush.bf16.msra.mxu2 %v1077_v2 }
   0x6   :  { %111 = vmatpush.bf16.msra.mxu0 %v1072_v3 }
   0x7   :  { %160 = vmatpush.bf16.msra.mxu1 %v1068_v4 }
   0x8   :  { %224 = vmatpush.bf16.msra.mxu2 %v1076_v5 }
   0x9   :  { %18 = vsyncpa [#allocation4], 0  ;;  %v1070_v9 = vld [vmem:[%s1518_s1 + $0x20] sm:$0xff]  ;;  %v61_v12 = vld [vmem:[%s1517_s0 + $0x9] sm:$0xff]  ;;  %vm99_vm0 = vcmask 523264   ;;  %vm341_vm4 = vcmask 64512  }
   0xa   :  { %v1066_v10 = vld [vmem:[%s1518_s1] sm:$0xff]  ;;  %112 = vmatpush.bf16.msra.mxu0 %v1071_v6  ;;  %v47_v14 = vld [vmem:[%s1517_s0 + $0x8] sm:$0xff]  ;;  %v48_v23 = vld [vmem:[%s1517_s0 + $0x18] sm:$0xff]  ;;  %s852_s3 = sshll.u32 %s1530_s13, 4  ;;  %s1139_s18 = smov 8   ;;  %s853_s3 = int_to_ptr.hbm [resolvable:$true] %s852_s3 }
   0xb   :  { %v60_v11 = vld [vmem:[%s1517_s0 + $0x1] sm:$0xff]  ;;  %161 = vmatpush.bf16.msra.mxu1 %v1067_v7  ;;  %v175_v17 = vld [vmem:[%s1517_s0 + $0xa] sm:$0xff]  ;;  %v62_v21 = vld [vmem:[%s1517_s0 + $0x19] sm:$0xff] }
   0xc   :  { %v46_v13 = vld [vmem:[%s1517_s0] sm:$0xff]  ;;  %225 = vmatpush.bf16.msra.mxu2 %v1075_v8  ;;  %v64_v18 = vpack.c.bf16 %v61_v12, %v60_v11  ;;  %v279_v30 = vld [vmem:[%s1526_s9 + $0x78] sm:$0xff]  ;;  %v278_v31 = vld [vmem:[%s1526_s9 + $0x70] sm:$0xff] }
   0xd   :  { %v1074_v15 = vld [vmem:[%s1518_s1 + $0x40] sm:$0xff]  ;;  %v50_v19 = vpack.c.bf16 %v47_v14, %v46_v13  ;;  %280 = vmatpush.msra.mxu3 %v279_v30  ;;  %v277_v32 = vld [vmem:[%s1526_s9 + $0x68] sm:$0xff]  ;;  %v275_v34 = vld [vmem:[%s1526_s9 + $0x58] sm:$0xff] }
   0xe   :  { %v174_v16 = vld [vmem:[%s1517_s0 + $0x2] sm:$0xff]  ;;  %113 = vmatpush.bf16.msra.mxu0 %v1070_v9  ;;  %v176_v25 = vld [vmem:[%s1517_s0 + $0x1a] sm:$0xff]  ;;  %v274_v35 = vld [vmem:[%s1526_s9 + $0x50] sm:$0xff] }
   0xf   :  { %162 = vmatpush.bf16.msra.mxu1 %v1066_v10  ;;  %v178_v20 = vpack.c.bf16 %v175_v17, %v174_v16  ;;  %v63_v22 = vld [vmem:[%s1517_s0 + $0x21] sm:$0xff]  ;;  %281 = vmatpush.msra.mxu3 %v278_v31  ;;  %v271_v40 = vld [vmem:[%s1526_s9 + $0x38] sm:$0xff]  ;;  %v270_v41 = vld [vmem:[%s1526_s9 + $0x30] sm:$0xff] }
  0x10   :  { %226 = vmatpush.bf16.msra.mxu2 %v1074_v15  ;;  %v49_v24 = vld [vmem:[%s1517_s0 + $0x20] sm:$0xff]  ;;  %v65_v27 = vpack.c.bf16 %v63_v22, %v62_v21  ;;  %v273_v36 = vld [vmem:[%s1526_s9 + $0x48] sm:$0xff]  ;;  %v267_v44 = vld [vmem:[%s1526_s9 + $0x18] sm:$0xff] }
  0x11   :  { %888 = vmatmul.msk.bf16.vlgmr.msra.gmra.mxu0 %vm99_vm0, %v64_v18  ;;  %v177_v26 = vld [vmem:[%s1517_s0 + $0x22] sm:$0xff]  ;;  %v51_v28 = vpack.c.bf16 %v49_v24, %v48_v23  ;;  %282 = vmatpush.msra.mxu3 %v277_v32  ;;  %v266_v48 = vld [vmem:[%s1526_s9 + $0x10] sm:$0xff]  ;;  %s1138_s0 = smov 128  }
  0x12   :  { %906 = vmatmul.msk.bf16.vlgmr.msra.gmra.mxu1 %vm99_vm0, %v50_v19  ;;  %v179_v29 = vpack.c.bf16 %v177_v26, %v176_v25  ;;  %v276_v33 = vld [vmem:[%s1526_s9 + $0x60] sm:$0xff]  ;;  %v269_v42 = vld [vmem:[%s1526_s9 + $0x28] sm:$0xff] }
  0x13   :  { %932 = vmatmul.msk.bf16.vlgmr.msra.gmra.mxu2 %vm99_vm0, %v178_v20  ;;  %300 = vmatpush.msrb.mxu1 %v279_v30  ;;  %v272_v37 = vld [vmem:[%s1526_s9 + $0x40] sm:$0xff]  ;;  %v265_v49 = vld [vmem:[%s1526_s9 + $0x8] sm:$0xff] }
  0x14   :  { %283 = vmatpush.msra.mxu3 %v276_v33  ;;  %v268_v43 = vld [vmem:[%s1526_s9 + $0x20] sm:$0xff] }
  0x15   :  { %301 = vmatpush.msrb.mxu1 %v278_v31  ;;  %v264_v50 = vld [vmem:[%s1526_s9] sm:$0xff]  ;;  %v1093_v31 = vld [vmem:[%s1519_s2 + $0x78] sm:$0xff] }
  0x16   :  { %284 = vmatpush.msra.mxu3 %v275_v34  ;;  %v340_v24 = vld [vmem:[%s1527_s10] sm:$0xff]  ;;  %503 = vmatpush.bf16.msrb.mxu2 %v1093_v31 }
  0x17   :  { %302 = vmatpush.msrb.mxu1 %v277_v32  ;;  %v1085_v32 = vld [vmem:[%s1519_s2 + $0x38] sm:$0xff] }
  0x18   :  { %285 = vmatpush.msra.mxu3 %v274_v35 }
  0x19   :  { %303 = vmatpush.msrb.mxu1 %v276_v33  ;;  %v1101_v33 = vld [vmem:[%s1519_s2 + $0xb8] sm:$0xff] }
  0x1a   :  { %286 = vmatpush.msra.mxu3 %v273_v36  ;;  %660 = vmatpush.bf16.msrb.mxu0 %v1101_v33 }
  0x1b   :  { %304 = vmatpush.msrb.mxu1 %v275_v34 }
  0x1c   :  { %287 = vmatpush.msra.mxu3 %v272_v37 }
  0x1d   :  { %305 = vmatpush.msrb.mxu1 %v274_v35  ;;  %v1092_v35 = vld [vmem:[%s1519_s2 + $0x70] sm:$0xff] }
  0x1e   :  { %288 = vmatpush.msra.mxu3 %v271_v40  ;;  %504 = vmatpush.bf16.msrb.mxu2 %v1092_v35  ;;  %v720_v35 = vld [vmem:[%s1528_s11 + $0x78] sm:$0xff] }
  0x1f   :  { %306 = vmatpush.msrb.mxu1 %v273_v36  ;;  %v1084_v36 = vld [vmem:[%s1519_s2 + $0x30] sm:$0xff] }
  0x20   :  { %289 = vmatpush.msra.mxu3 %v270_v41 }
  0x21   :  { %889 = vmatmul.msk.bf16.gmra.mxu0 %vm99_vm0, %v65_v27  ;;  %307 = vmatpush.msrb.mxu1 %v272_v37  ;;  %v1100_v37 = vld [vmem:[%s1519_s2 + $0xb0] sm:$0xff] }
  0x22   :  { %907 = vmatmul.msk.bf16.gmra.mxu1 %vm99_vm0, %v51_v28  ;;  %290 = vmatpush.msra.mxu3 %v269_v42 }
  0x23   :  { %933 = vmatmul.msk.bf16.gmra.mxu2 %vm99_vm0, %v179_v29  ;;  %308 = vmatpush.msrb.mxu1 %v271_v40 }
  0x24   :  { %291 = vmatpush.msra.mxu3 %v268_v43  ;;  %661 = vmatpush.bf16.msrb.mxu0 %v1100_v37  ;;  %v718_v37 = vld [vmem:[%s1528_s11 + $0x68] sm:$0xff] }
  0x25   :  { %309 = vmatpush.msrb.mxu1 %v270_v41 }
  0x26   :  { %292 = vmatpush.msra.mxu3 %v267_v44 }
  0x27   :  { %310 = vmatpush.msrb.mxu1 %v269_v42 }
  0x28   :  { %293 = vmatpush.msra.mxu3 %v266_v48 }
  0x29   :  { %311 = vmatpush.msrb.mxu1 %v268_v43  ;;  %v324_v43 = vld [vmem:[%s1522_s5] sm:$0x1] }
  0x2a   :  { %294 = vmatpush.msra.mxu3 %v265_v49 }
  0x2b   :  { %312 = vmatpush.msrb.mxu1 %v267_v44 }
  0x2c   :  { %295 = vmatpush.msra.mxu3 %v264_v50 }
  0x2d   :  { %313 = vmatpush.msrb.mxu1 %v266_v48  ;;  %v337_v48 = vld [vmem:[%s1523_s6] sm:$0x1] }
  0x2e   :  { %570 = vmatpush.bf16.msrb.mxu3 %v1085_v32 }
  0x2f   :  { %314 = vmatpush.msrb.mxu1 %v265_v49 }
  0x31   :  { %315 = vmatpush.msrb.mxu1 %v264_v50  ;;  %v1091_v50 = vld [vmem:[%s1519_s2 + $0x68] sm:$0xff] }
  0x32   :  { %571 = vmatpush.bf16.msrb.mxu3 %v1084_v36  ;;  %505 = vmatpush.bf16.msrb.mxu2 %v1091_v50  ;;  %v719_v36 = vld [vmem:[%s1528_s11 + $0x70] sm:$0xff]  ;;  %v708_v50 = vld [vmem:[%s1528_s11 + $0x18] sm:$0xff] }
  0x33   :  { %360 = vmatpush.msra.mxu1 %v340_v24 }
  0x8e   :  { %v115_v38 = vpop.f32.mrf.mxu0 }
  0x8f   :  { %v164_v39 = vpop.f32.mrf.mxu1 }
  0x90   :  { %v165_v54 = vadd.f32 %v164_v39, %v115_v38 }
  0x96   :  { %v228_v45 = vpop.f32.mrf.mxu2  ;;  %v117_v46 = vpop.f32.mrf.mxu0 }
  0x97   :  { %v166_v47 = vpop.f32.mrf.mxu1  ;;  %v1338_v59 = vadd.f32 %v228_v45, %v165_v54  ;;  %v1082_v54 = vld [vmem:[%s1519_s2 + $0x20] sm:$0xff] }
  0x98   :  { %v167_v55 = vadd.f32 %v166_v47, %v117_v46 }
  0x99   :  { %v251_v0 = vmul.f32 %v1338_v59, %v1338_v59 }
  0x9e   :  { %v230_v51 = vpop.f32.mrf.mxu2  ;;  %v120_v52 = vpop.f32.mrf.mxu0 }
  0x9f   :  { %v169_v53 = vpop.f32.mrf.mxu1  ;;  %v1336_v58 = vadd.f32 %v230_v51, %v167_v55  ;;  %v1090_v51 = vld [vmem:[%s1519_s2 + $0x60] sm:$0xff] }
  0xa0   :  { %v170_v56 = vadd.f32 %v169_v53, %v120_v52  ;;  %506 = vmatpush.bf16.msrb.mxu2 %v1090_v51  ;;  %v1083_v52 = vld [vmem:[%s1519_s2 + $0x28] sm:$0xff]  ;;  %v1098_v55 = vld [vmem:[%s1519_s2 + $0xa0] sm:$0xff] }
  0xa1   :  { %v252_v63 = vmul.f32 %v1336_v58, %v1336_v58  ;;  %v242_v1 = vadd.f32 %v1336_v58, %v1338_v59  ;;  %v1099_v53 = vld [vmem:[%s1519_s2 + $0xa8] sm:$0xff]  ;;  %572 = vmatpush.bf16.msrb.mxu3 %v1083_v52  ;;  %v707_v52 = vld [vmem:[%s1528_s11 + $0x10] sm:$0xff] }
  0xa2   :  { %662 = vmatpush.bf16.msrb.mxu0 %v1099_v53 }
  0xa3   :  { %v255_v5 = vadd.f32 %v252_v63, %v251_v0  ;;  %v1087_v63 = vld [vmem:[%s1519_s2 + $0x48] sm:$0xff]  ;;  %v1080_v0 = vld [vmem:[%s1519_s2 + $0x10] sm:$0xff] }
  0xa5   :  { %573 = vmatpush.bf16.msrb.mxu3 %v1082_v54  ;;  %v706_v54 = vld [vmem:[%s1528_s11 + $0x8] sm:$0xff] }
  0xa6   :  { %v233_v57 = vpop.f32.mrf.mxu2  ;;  %v122_v61 = vpop.f32.mrf.mxu0  ;;  %663 = vmatpush.bf16.msrb.mxu0 %v1098_v55 }
  0xa7   :  { %v1340_v60 = vadd.f32 %v233_v57, %v170_v56  ;;  %v171_v62 = vpop.f32.mrf.mxu1  ;;  %v1089_v56 = vld [vmem:[%s1519_s2 + $0x58] sm:$0xff]  ;;  %v1088_v57 = vld [vmem:[%s1519_s2 + $0x50] sm:$0xff] }
  0xa8   :  { %v172_v3 = vadd.f32 %v171_v62, %v122_v61  ;;  %507 = vmatpush.bf16.msrb.mxu2 %v1089_v56  ;;  %v1081_v61 = vld [vmem:[%s1519_s2 + $0x18] sm:$0xff]  ;;  %v705_v56 = vld [vmem:[%s1528_s11] sm:$0xff] }
  0xa9   :  { %v253_v2 = vmul.f32 %v1340_v60, %v1340_v60  ;;  %v243_v6 = vadd.f32 %v242_v1, %v1340_v60  ;;  %v1097_v62 = vld [vmem:[%s1519_s2 + $0x98] sm:$0xff]  ;;  %574 = vmatpush.bf16.msrb.mxu3 %v1081_v61  ;;  %v1096_v1 = vld [vmem:[%s1519_s2 + $0x90] sm:$0xff] }
  0xaa   :  { %664 = vmatpush.bf16.msrb.mxu0 %v1097_v62 }
  0xab   :  { %v256_v8 = vadd.f32 %v255_v5, %v253_v2  ;;  %v1086_v2 = vld [vmem:[%s1519_s2 + $0x40] sm:$0xff]  ;;  %v1136_v5 = vmov 0.0  }
  0xac   :  { %508 = vmatpush.bf16.msrb.mxu2 %v1088_v57  ;;  %402 = vst [vmem:[#allocation2] sm:$0x1] %v1136_v5 }
  0xad   :  { %575 = vmatpush.bf16.msrb.mxu3 %v1080_v0  ;;  %403 = vst [vmem:[#allocation2 + $0x18] sm:$0x1] %v1136_v5 }
  0xae   :  { %v235_v4 = vpop.f32.mrf.mxu2  ;;  %665 = vmatpush.bf16.msrb.mxu0 %v1096_v1  ;;  %404 = vst [vmem:[#allocation2 + $0x11] sm:$0x1] %v1136_v5 }
  0xaf   :  { %v1351_v7 = vadd.f32 %v235_v4, %v172_v3  ;;  %v1079_v3 = vld [vmem:[%s1519_s2 + $0x8] sm:$0xff]  ;;  %405 = vst [vmem:[#allocation2 + $0x29] sm:$0x1] %v1136_v5 }
  0xb0   :  { %509 = vmatpush.bf16.msrb.mxu2 %v1087_v63  ;;  %v1095_v4 = vld [vmem:[%s1519_s2 + $0x88] sm:$0xff] }
  0xb1   :  { %v244_v9 = vadd.f32 %v243_v6, %v1351_v7  ;;  %v254_v10 = vmul.f32 %v1351_v7, %v1351_v7  ;;  %576 = vmatpush.bf16.msrb.mxu3 %v1079_v3  ;;  %v1078_v6 = vld [vmem:[%s1519_s2] sm:$0xff] }
  0xb2   :  { %666 = vmatpush.bf16.msrb.mxu0 %v1095_v4 }
  0xb3   :  { %v245_v11 = vrot.slane %v244_v9, 4  ;;  %v257_v12 = vadd.f32 %v256_v8, %v254_v10  ;;  %v1094_v8 = vld [vmem:[%s1519_s2 + $0x80] sm:$0xff] }
  0xb4   :  { %510 = vmatpush.bf16.msrb.mxu2 %v1086_v2 }
  0xb5   :  { %v258_v13 = vrot.slane %v257_v12, 4  ;;  %v246_v14 = vadd.f32 %v245_v11, %v244_v9  ;;  %577 = vmatpush.bf16.msrb.mxu3 %v1078_v6 }
  0xb6   :  { %667 = vmatpush.bf16.msrb.mxu0 %v1094_v8 }
  0xb7   :  { %v247_v15 = vrot.slane %v246_v14, 2  ;;  %v259_v16 = vadd.f32 %v258_v13, %v257_v12 }
  0xb8   :  { %741 = vmatpush.msra.mxu2 %v720_v35 }
  0xb9   :  { %v248_v17 = vadd.f32 %v247_v15, %v246_v14  ;;  %v260_v18 = vrot.slane %v259_v16, 2 }
  0xba   :  { %721 = vmatpush.msra.mxu0 %v720_v35  ;;  %742 = vmatpush.msra.mxu2 %v719_v36 }
  0xbb   :  { %v249_v19 = vrot.slane %v248_v17, 1  ;;  %v261_v20 = vadd.f32 %v260_v18, %v259_v16 }
  0xbc   :  { %722 = vmatpush.msra.mxu0 %v719_v36  ;;  %743 = vmatpush.msra.mxu2 %v718_v37 }
  0xbd   :  { %v250_v21 = vadd.f32 %v249_v19, %v248_v17  ;;  %v262_v22 = vrot.slane %v261_v20, 1 }
  0xbe   :  { %723 = vmatpush.msra.mxu0 %v718_v37 }
  0xbf   :  { %296 = vmatmul.f32.vlgmr.msra.gmra.mxu3 %v250_v21  ;;  %v263_v23 = vadd.f32 %v262_v22, %v261_v20 }
  0xc1   :  { %316 = vmatmul.f32.vlgmr.msrb.gmra.mxu1 %v263_v23 }
  0xc2   :  { %383 = vmatpush.msrb.mxu1 %v340_v24 }
 0x13e   :  { %v317_v25 = vpop.f32.mrf.mxu1 }
 0x13f   :  { %v321_v28 = vmul.f32 0.001953125, %v317_v25 }
 0x142   :  { %v297_v26 = vpop.f32.mrf.mxu3 }
 0x143   :  { %v320_v27 = vmul.f32 0.001953125, %v297_v26 }
 0x145   :  { %v322_v29 = vmul.f32 %v320_v27, %v320_v27 }
 0x147   :  { %v323_v30 = vsub.f32 %v321_v28, %v322_v29 }
 0x149   :  { %v325_v34 = vadd.f32 1e-05, %v323_v30 }
 0x14b   :  { %1106 = vrsqrt.f32 %v325_v34  ;;  %vm332_vm2 = vweird.f32 %v325_v34 }
 0x151   :  { %v1107_v38 = vpop.eup %1106 }
 0x152   :  { %v327_v39 = vmul.f32 %v1107_v38, %v325_v34  ;;  %vm333_vm1 = vweird.f32 %v1107_v38 }
 0x153   :  { %vm334_vm3 = vmor %vm332_vm2, %vm333_vm1 }
 0x154   :  { %v328_v40 = vmul.f32 %v1107_v38, %v327_v39  ;;  %v716_v39 = vld [vmem:[%s1528_s11 + $0x58] sm:$0xff] }
 0x156   :  { %v329_v41 = vmul.f32 0.5, %v328_v40  ;;  %v715_v40 = vld [vmem:[%s1528_s11 + $0x50] sm:$0xff] }
 0x158   :  { %v330_v42 = vsub.f32 1.5, %v329_v41  ;;  %v714_v41 = vld [vmem:[%s1528_s11 + $0x48] sm:$0xff] }
 0x15a   :  { %v331_v44 = vmul.f32 %v1107_v38, %v330_v42 }
 0x15c   :  { %v335_v45 = vsel %vm334_vm3, %v1107_v38, %v331_v44  ;;  %v717_v38 = vld [vmem:[%s1528_s11 + $0x60] sm:$0xff] }
 0x15d   :  { %v336_v46 = vmul.f32 %v335_v45, %v324_v43  ;;  %724 = vmatpush.msra.mxu0 %v717_v38  ;;  %744 = vmatpush.msra.mxu2 %v717_v38  ;;  %v713_v43 = vld [vmem:[%s1528_s11 + $0x40] sm:$0xff]  ;;  %v712_v45 = vld [vmem:[%s1528_s11 + $0x38] sm:$0xff] }
 0x15f   :  { %934 = vmatmul.msk.f32.vlgmr.msra.gmra.mxu1 %vm341_vm4, %v336_v46  ;;  %v338_v47 = vmul.f32 %v336_v46, %v320_v27  ;;  %725 = vmatpush.msra.mxu0 %v716_v39  ;;  %v711_v46 = vld [vmem:[%s1528_s11 + $0x30] sm:$0xff] }
 0x160   :  { %745 = vmatpush.msra.mxu2 %v716_v39 }
 0x161   :  { %v339_v49 = vsub.f32 %v337_v48, %v338_v47  ;;  %726 = vmatpush.msra.mxu0 %v715_v40  ;;  %v710_v48 = vld [vmem:[%s1528_s11 + $0x28] sm:$0xff] }
 0x162   :  { %746 = vmatpush.msra.mxu2 %v715_v40 }
 0x163   :  { %727 = vmatpush.msra.mxu0 %v714_v41 }
 0x164   :  { %747 = vmatpush.msra.mxu2 %v714_v41 }
 0x165   :  { %728 = vmatpush.msra.mxu0 %v713_v43 }
 0x166   :  { %748 = vmatpush.msra.mxu2 %v713_v43 }
 0x167   :  { %935 = vmatmul.msk.f32.vlgmr.msrb.gmra.mxu1 %vm341_vm4, %v339_v49  ;;  %729 = vmatpush.msra.mxu0 %v712_v45  ;;  %v709_v49 = vld [vmem:[%s1528_s11 + $0x20] sm:$0xff] }
 0x168   :  { %749 = vmatpush.msra.mxu2 %v712_v45 }
 0x169   :  { %730 = vmatpush.msra.mxu0 %v711_v46 }
 0x16a   :  { %750 = vmatpush.msra.mxu2 %v711_v46 }
 0x16b   :  { %731 = vmatpush.msra.mxu0 %v710_v48 }
 0x16c   :  { %751 = vmatpush.msra.mxu2 %v710_v48 }
 0x16d   :  { %732 = vmatpush.msra.mxu0 %v709_v49 }
 0x16e   :  { %752 = vmatpush.msra.mxu2 %v709_v49 }
 0x16f   :  { %733 = vmatpush.msra.mxu0 %v708_v50 }
 0x170   :  { %753 = vmatpush.msra.mxu2 %v708_v50 }
 0x171   :  { %734 = vmatpush.msra.mxu0 %v707_v52 }
 0x172   :  { %754 = vmatpush.msra.mxu2 %v707_v52 }
 0x173   :  { %735 = vmatpush.msra.mxu0 %v706_v54 }
 0x174   :  { %755 = vmatpush.msra.mxu2 %v706_v54 }
 0x175   :  { %736 = vmatpush.msra.mxu0 %v705_v56 }
 0x176   :  { %756 = vmatpush.msra.mxu2 %v705_v56 }
 0x1dc   :  { %v362_v9 = vpop.f32.mrf.mxu1 }
 0x1dd   :  { %v388_v10 = vperm.slane %v362_v9, 0 }
 0x1df   :  { %v389_v11 = vmul.f32 %v388_v10, %v1338_v59  ;;  %v390_v13 = vmul.f32 %v388_v10, %v1336_v58  ;;  %v391_v14 = vmul.f32 %v388_v10, %v1340_v60  ;;  %v392_v15 = vmul.f32 %v388_v10, %v1351_v7 }
 0x1e4   :  { %v385_v12 = vpop.f32.mrf.mxu1 }
 0x1e5   :  { %v393_v16 = vperm.slane %v385_v12, 0 }
 0x1e7   :  { %v394_v17 = vadd.f32 %v393_v16, %v389_v11  ;;  %v395_v18 = vadd.f32 %v393_v16, %v390_v13  ;;  %v396_v19 = vadd.f32 %v393_v16, %v391_v14  ;;  %v397_v20 = vadd.f32 %v393_v16, %v392_v15 }
 0x1e9   :  { %v398_v21 = vmax.f32 %v394_v17, 0.0  ;;  %v399_v22 = vmax.f32 %v395_v18, 0.0  ;;  %v400_v23 = vmax.f32 %v396_v19, 0.0  ;;  %v401_v24 = vmax.f32 %v397_v20, 0.0 }
 0x1eb   :  { %406 = vst [vmem:[#allocation2 + $0x1] sm:$0xff] %v398_v21  ;;  %v436_v25 = vpack.c.bf16 %v399_v22, %v398_v21  ;;  %v437_v28 = vpack.c.bf16 %v401_v24, %v400_v23 }
 0x1ec   :  { %407 = vst [vmem:[#allocation2 + $0x9] sm:$0xff] %v399_v22 }
 0x1ed   :  { %408 = vst [vmem:[#allocation2 + $0x19] sm:$0xff] %v400_v23  ;;  %511 = vmatmul.bf16.vlgmr.msrb.gmra.mxu2 %v436_v25 }
 0x1ee   :  { %409 = vst [vmem:[#allocation2 + $0x21] sm:$0xff] %v401_v24 }
 0x1f2   :  { %v410_v58 = vld [vmem:[#allocation2] sm:$0xff] }
 0x1f3   :  { %v411_v59 = vld [vmem:[#allocation2 + $0x8] sm:$0xff] }
 0x1f4   :  { %v589_v60 = vld [vmem:[#allocation2 + $0x2] sm:$0xff]  ;;  %v590_v26 = vld [vmem:[#allocation2 + $0xa] sm:$0xff]  ;;  %v414_v7 = vpack.c.bf16 %v411_v59, %v410_v58  ;;  %v412_v29 = vld [vmem:[#allocation2 + $0x18] sm:$0xff] }
 0x1f5   :  { %v593_v27 = vpack.c.bf16 %v590_v26, %v589_v60  ;;  %v413_v30 = vld [vmem:[#allocation2 + $0x20] sm:$0xff] }
 0x1f6   :  { %578 = vmatmul.bf16.vlgmr.msrb.gmra.mxu3 %v414_v7  ;;  %v591_v31 = vld [vmem:[#allocation2 + $0x1a] sm:$0xff]  ;;  %v592_v32 = vld [vmem:[#allocation2 + $0x22] sm:$0xff]  ;;  %v415_v33 = vpack.c.bf16 %v413_v30, %v412_v29 }
 0x1f7   :  { %668 = vmatmul.bf16.vlgmr.msrb.gmra.mxu0 %v593_v27  ;;  %v594_v34 = vpack.c.bf16 %v592_v32, %v591_v31  ;;  %v781_v30 = vld [vmem:[%s1529_s12] sm:$0xff] }
 0x1f8   :  { %800 = vmatpush.msra.mxu1 %v781_v30 }
 0x1fa   :  { %823 = vmatpush.msrb.mxu1 %v781_v30 }
 0x1fd   :  { %516 = vmatmul.bf16.gmra.mxu2 %v437_v28 }
 0x206   :  { %583 = vmatmul.bf16.gmra.mxu3 %v415_v33 }
 0x207   :  { %673 = vmatmul.bf16.gmra.mxu0 %v594_v34 }
 0x270   :  { %v512_v42 = vpop.f32.mrf.mxu2 }
 0x274   :  { %v669_v44 = vpop.f32.mrf.mxu0 }
 0x278   :  { %v514_v51 = vpop.f32.mrf.mxu2 }
 0x279   :  { %v579_v47 = vpop.f32.mrf.mxu3 }
 0x27a   :  { %v580_v0 = vadd.f32 %v579_v47, %v512_v42  ;;  %v765_v42 = vld [vmem:[%s1524_s7] sm:$0x1]  ;;  %s1137_s7 = smov [#allocation3]  }
 0x27b   :  { %v778_v47 = vld [vmem:[%s1525_s8] sm:$0x1]  ;;  %s850_s16 = sshll.u32 %s1137_s7, 4  ;;  %s851_s16 = int_to_ptr.vmem [resolvable:$true] %s850_s16 }
 0x27c   :  { %v671_v53 = vpop.f32.mrf.mxu0  ;;  %v679_v3 = vadd.f32 %v669_v44, %v580_v0 }
 0x27e   :  { %v692_v9 = vmul.f32 %v679_v3, %v679_v3 }
 0x280   :  { %v517_v57 = vpop.f32.mrf.mxu2 }
 0x281   :  { %v581_v55 = vpop.f32.mrf.mxu3 }
 0x282   :  { %v582_v61 = vadd.f32 %v581_v55, %v514_v51 }
 0x284   :  { %v674_v62 = vpop.f32.mrf.mxu0  ;;  %v1491_v2 = vadd.f32 %v671_v53, %v582_v61 }
 0x286   :  { %v693_v5 = vmul.f32 %v1491_v2, %v1491_v2  ;;  %v683_v10 = vadd.f32 %v1491_v2, %v679_v3 }
 0x288   :  { %v519_v6 = vpop.f32.mrf.mxu2  ;;  %v696_v14 = vadd.f32 %v693_v5, %v692_v9 }
 0x289   :  { %v584_v63 = vpop.f32.mrf.mxu3 }
 0x28a   :  { %v585_v1 = vadd.f32 %v584_v63, %v517_v57 }
 0x28c   :  { %v1493_v4 = vadd.f32 %v674_v62, %v585_v1  ;;  %v676_v13 = vpop.f32.mrf.mxu0 }
 0x28e   :  { %v694_v11 = vmul.f32 %v1493_v4, %v1493_v4  ;;  %v684_v15 = vadd.f32 %v683_v10, %v1493_v4 }
 0x290   :  { %v697_v17 = vadd.f32 %v696_v14, %v694_v11 }
 0x291   :  { %v586_v8 = vpop.f32.mrf.mxu3 }
 0x292   :  { %v587_v12 = vadd.f32 %v586_v8, %v519_v6 }
 0x294   :  { %v682_v16 = vadd.f32 %v676_v13, %v587_v12 }
 0x296   :  { %v685_v18 = vadd.f32 %v684_v15, %v682_v16  ;;  %v695_v19 = vmul.f32 %v682_v16, %v682_v16 }
 0x298   :  { %v686_v20 = vrot.slane %v685_v18, 4  ;;  %v698_v21 = vadd.f32 %v697_v17, %v695_v19 }
 0x29a   :  { %v687_v22 = vadd.f32 %v686_v20, %v685_v18  ;;  %v699_v23 = vrot.slane %v698_v21, 4 }
 0x29c   :  { %v688_v24 = vrot.slane %v687_v22, 2  ;;  %v700_v25 = vadd.f32 %v699_v23, %v698_v21 }
 0x29e   :  { %v689_v58 = vadd.f32 %v688_v24, %v687_v22  ;;  %v701_v59 = vrot.slane %v700_v25, 2 }
 0x2a0   :  { %v690_v60 = vrot.slane %v689_v58, 1  ;;  %v702_v26 = vadd.f32 %v701_v59, %v700_v25 }
 0x2a2   :  { %v691_v7 = vadd.f32 %v690_v60, %v689_v58  ;;  %v703_v27 = vrot.slane %v702_v26, 1 }
 0x2a4   :  { %737 = vmatmul.f32.vlgmr.msra.gmra.mxu0 %v691_v7  ;;  %v704_v28 = vadd.f32 %v703_v27, %v702_v26 }
 0x2a6   :  { %757 = vmatmul.f32.vlgmr.msra.gmra.mxu2 %v704_v28 }
 0x321   :  { %v738_v29 = vpop.f32.mrf.mxu0 }
 0x322   :  { %v761_v31 = vmul.f32 0.001953125, %v738_v29 }
 0x324   :  { %v763_v33 = vmul.f32 %v761_v31, %v761_v31 }
 0x329   :  { %v758_v32 = vpop.f32.mrf.mxu2 }
 0x32a   :  { %v762_v34 = vmul.f32 0.001953125, %v758_v32 }
 0x32c   :  { %v764_v35 = vsub.f32 %v762_v34, %v763_v33 }
 0x32e   :  { %v766_v36 = vadd.f32 1e-05, %v764_v35 }
 0x330   :  { %1108 = vrsqrt.f32 %v766_v36  ;;  %vm773_vm6 = vweird.f32 %v766_v36 }
 0x336   :  { %v1109_v37 = vpop.eup %1108 }
 0x337   :  { %v768_v38 = vmul.f32 %v1109_v37, %v766_v36  ;;  %vm774_vm5 = vweird.f32 %v1109_v37 }
 0x338   :  { %vm775_vm7 = vmor %vm773_vm6, %vm774_vm5 }
 0x339   :  { %v769_v39 = vmul.f32 %v1109_v37, %v768_v38 }
 0x33b   :  { %v770_v40 = vmul.f32 0.5, %v769_v39 }
 0x33d   :  { %v771_v41 = vsub.f32 1.5, %v770_v40 }
 0x33f   :  { %v772_v43 = vmul.f32 %v1109_v37, %v771_v41 }
 0x341   :  { %v776_v44 = vsel %vm775_vm7, %v1109_v37, %v772_v43 }
 0x342   :  { %v777_v45 = vmul.f32 %v776_v44, %v765_v42 }
 0x344   :  { %1064 = vmatmul.msk.f32.vlgmr.msra.gmra.mxu1 %vm341_vm4, %v777_v45  ;;  %v779_v46 = vmul.f32 %v777_v45, %v761_v31 }
 0x346   :  { %v780_v48 = vsub.f32 %v778_v47, %v779_v46 }
 0x34c   :  { %1065 = vmatmul.msk.f32.vlgmr.msrb.gmra.mxu1 %vm341_vm4, %v780_v48 }
 0x3c1   :  { %v802_v49 = vpop.f32.mrf.mxu1 }
 0x3c2   :  { %v828_v50 = vperm.slane %v802_v49, 0 }
 0x3c4   :  { %v829_v51 = vmul.f32 %v828_v50, %v679_v3  ;;  %v830_v53 = vmul.f32 %v828_v50, %v1491_v2  ;;  %v831_v54 = vmul.f32 %v828_v50, %v1493_v4  ;;  %v832_v55 = vmul.f32 %v828_v50, %v682_v16 }
 0x3c9   :  { %v825_v52 = vpop.f32.mrf.mxu1 }
 0x3ca   :  { %v833_v56 = vperm.slane %v825_v52, 0 }
 0x3cc   :  { %v834_v57 = vadd.f32 %v833_v56, %v829_v51  ;;  %v835_v61 = vadd.f32 %v833_v56, %v830_v53  ;;  %v836_v62 = vadd.f32 %v833_v56, %v831_v54  ;;  %v837_v63 = vadd.f32 %v833_v56, %v832_v55 }
 0x3ce   :  { %v838_v0 = vmax.f32 %v834_v57, 0.0  ;;  %v839_v1 = vmax.f32 %v835_v61, 0.0  ;;  %v840_v3 = vmax.f32 %v836_v62, 0.0  ;;  %v841_v5 = vmax.f32 %v837_v63, 0.0 }
 0x3d0   :  { %842 = vst [vmem:[#allocation3] sm:$0xff] %v838_v0 }
 0x3d1   :  { %843 = vst [vmem:[#allocation3 + $0x8] sm:$0xff] %v839_v1 }
 0x3d2   :  { %844 = vst [vmem:[#allocation3 + $0x10] sm:$0xff] %v840_v3 }
 0x3d3   :  { %845 = vst [vmem:[#allocation3 + $0x18] sm:$0xff] %v841_v5 }
 0x3d4   :  { %858 = dma.vmem_to_hbm [thread:$0]  %s851_s16, 512, %s853_s3, [#allocation4], %s1138_s0, %s1138_s0, %s1139_s18  }
 0x3d5   :  { %1134 = dma.done.wait [#allocation4], 512  }
 0x3d6   :  { %1135 = vsyncadd [#allocation4], 4294966784 }
 0x3d7   :  { %863 = vsyncpa [#allocation4], 1 }

</bundles_post_ra>
